<compile_context>
chip_gen: v7x
topology: tpu7x:2x2x1
jax: 0.10.0
libtpu: 0.0.40
codegen_flags: <defaults>
</compile_context>

<pallas_src>
import math

import jax
import jax.numpy as jnp
from jax.experimental import pallas as pl
from jax.experimental.pallas import tpu as pltpu

_HIDDEN = 16
_NUM_CLASSES = 2


def _round_up(x, m):
    return ((x + m - 1) // m) * m


def _mlp_kernel(x_ref, w1_ref, b1_ref, w2_ref, b2_ref, o_ref):
    """out = relu(x @ w1 + b1) @ w2 + b2 with f32 accumulation on the MXU."""
    h = jnp.dot(x_ref[...], w1_ref[...], preferred_element_type=jnp.float32)
    h = jnp.maximum(h + b1_ref[...], 0.0)                       # bias + ReLU (VPU, f32)
    out = jnp.dot(h, w2_ref[...], preferred_element_type=jnp.float32)
    o_ref[...] = (out + b2_ref[...]).astype(o_ref.dtype)


def classifier_forward(x, w1, b1, w2, b2, *, tile_rows=16384, min_pallas_batch=1024):
    """Forward pass of Classifier.

    x : (B, latent)          w1 : (latent, 16)   b1 : (16,) or (1, 16)
                             w2 : (16, 2)        b2 : (2,)  or (1, 2)
    Weights are stored transposed vs PyTorch (in_features, out_features).
    Returns (B, 2) float32 logits.
    """
    B, L = x.shape
    H = w1.shape[-1]
    C = w2.shape[-1]

    b1 = jnp.asarray(b1, jnp.float32).reshape(1, H)
    b2 = jnp.asarray(b2, jnp.float32).reshape(1, C)
    # Stream x in whatever dtype it already lives in HBM (no wrapper-side
    # astype: that would be an extra un-hidden HBM pass).  Casting the tiny
    # weights to match the streamed dtype is free.
    w1_k = jnp.asarray(w1).astype(x.dtype)
    w2_k = jnp.asarray(w2, jnp.float32)

    # ---- small-batch fallback: fused XLA beats a pallas_call launch. ----
    if B < min_pallas_batch:
        h = jnp.maximum(jnp.dot(x, w1_k, preferred_element_type=jnp.float32) + b1, 0.0)
        return jnp.dot(h, w2_k, preferred_element_type=jnp.float32) + b2

    cost = pl.CostEstimate(
        flops=2 * B * (L * H + H * C),
        transcendentals=0,
        bytes_accessed=(B * L * jnp.dtype(x.dtype).itemsize
                        + B * C * 4
                        + L * H * jnp.dtype(w1_k.dtype).itemsize
                        + (H * C + H + C) * 4),
    )
    cparams = pltpu.CompilerParams(
        dimension_semantics=("parallel",),   # shard batch grid across TCs (v7x megacore)
        vmem_limit_bytes=48 << 20,           # padded-tile headroom, <= v7x 64 MiB physical
    )

    # ---- packed path: P rows of x per 128-lane row, block-diagonal weights. ----
    P = 128 // L if (0 < L <= 128 and 128 % L == 0) else 1
    if P > 1 and B % P == 0:
        Bp = B // P
        xp = x.reshape(Bp, P * L)                               # contiguous -> free
        w1_blk = jnp.kron(jnp.eye(P, dtype=w1_k.dtype), w1_k)   # (P*L, P*H)
        w2_blk = jnp.kron(jnp.eye(P, dtype=jnp.float32), w2_k)  # (P*H, P*C)
        b1_blk = jnp.tile(b1, (1, P))                           # (1, P*H)
        b2_blk = jnp.tile(b2, (1, P))                           # (1, P*C)

        # Tile (in packed rows): big enough to amortize ~0.35us/step and reach
        # the HBM roofline, capped so the grid has >= 2 steps and clamped to Bp.
        tbp = _round_up(max(tile_rows // P, 8), 8)
        tbp = min(tbp, max(_round_up(pl.cdiv(Bp, 2), 8), 8))
        tbp = min(tbp, Bp)                                      # == full dim if smaller
        grid = (pl.cdiv(Bp, tbp),)

        out_p = pl.pallas_call(
            _mlp_kernel,
            out_shape=jax.ShapeDtypeStruct((Bp, P * C), jnp.float32),
            grid=grid,
            in_specs=[
                pl.BlockSpec((tbp, P * L), lambda i: (i, 0)),       # x: streamed tiles
                pl.BlockSpec((P * L, P * H), lambda i: (0, 0)),     # w1_blk: resident
                pl.BlockSpec((1, P * H), lambda i: (0, 0)),         # b1_blk: resident
                pl.BlockSpec((P * H, P * C), lambda i: (0, 0)),     # w2_blk: resident
                pl.BlockSpec((1, P * C), lambda i: (0, 0)),         # b2_blk: resident
            ],
            out_specs=pl.BlockSpec((tbp, P * C), lambda i: (i, 0)),
            compiler_params=cparams,
            cost_estimate=cost,
        )(xp, w1_blk, b1_blk, w2_blk, b2_blk)
        # Each packed row holds [row0 logits | row1 logits | ...]: contiguous
        # reshape back to (B, C) -- no transpose, no extra HBM round trip.
        return out_p.reshape(B, C)

    # ---- generic path (latent doesn't pack into 128 lanes, or B % P != 0) ----
    # The 32-wide x tile pads to 128 lanes in VMEM (4x nominal footprint), so
    # cap the tile at 8192 rows; still >= 1 MiB of real HBM traffic per step.
    tb = _round_up(max(min(tile_rows, 8192), 8), 8)
    tb = min(tb, max(_round_up(pl.cdiv(B, 2), 8), 8))            # >= 2 grid steps
    tb = min(tb, B)
    grid = (pl.cdiv(B, tb),)

    out = pl.pallas_call(
        _mlp_kernel,
        out_shape=jax.ShapeDtypeStruct((B, C), jnp.float32),
        grid=grid,
        in_specs=[
            pl.BlockSpec((tb, L), lambda i: (i, 0)),             # x: streamed tiles
            pl.BlockSpec((L, H), lambda i: (0, 0)),              # w1: resident
            pl.BlockSpec((1, H), lambda i: (0, 0)),              # b1: resident
            pl.BlockSpec((H, C), lambda i: (0, 0)),              # w2: resident
            pl.BlockSpec((1, C), lambda i: (0, 0)),              # b2: resident
        ],
        out_specs=pl.BlockSpec((tb, C), lambda i: (i, 0)),       # tiny output (1/16 of input)
        compiler_params=cparams,
        cost_estimate=cost,
    )(x, w1_k, b1, w2_k, b2)
    return out


def init_classifier_params(key, latent_size, dtype=jnp.float32):
    """Mirrors weights_init: xavier_uniform(gain=0.5) weights, zero biases."""
    k1, k2 = jax.random.split(key)

    def xavier_uniform(k, fan_in, fan_out, gain):
        bound = gain * math.sqrt(6.0 / (fan_in + fan_out))
        # stored as (in, out) == transpose of PyTorch's (out, in)
        return jax.random.uniform(k, (fan_in, fan_out), dtype=dtype,
                                  minval=-bound, maxval=bound)

    w1 = xavier_uniform(k1, latent_size, _HIDDEN, gain=0.5)
    b1 = jnp.zeros((1, _HIDDEN), dtype=dtype)
    w2 = xavier_uniform(k2, _HIDDEN, _NUM_CLASSES, gain=0.5)
    b2 = jnp.zeros((1, _NUM_CLASSES), dtype=dtype)
    return w1, b1, w2, b2


def reference_forward(x, w1, b1, w2, b2):
    h = jnp.maximum(x.astype(jnp.float32) @ w1 + b1.reshape(1, -1), 0.0)
    return h @ w2 + b2.reshape(1, -1)


if __name__ == "__main__":
    latent_size = 32

    key = jax.random.PRNGKey(0)
    kp, k1, k2, k3 = jax.random.split(key, 4)
    w1, b1, w2, b2 = init_classifier_params(kp, latent_size)

    # Module-scale small shape (batch=8, latent=32): small-batch fused path.
    x_small = jax.random.normal(k1, (8, latent_size), dtype=jnp.float32)
    out_small = jax.block_until_ready(classifier_forward(x_small, w1, b1, w2, b2))
    ref_small = reference_forward(x_small, w1, b1, w2, b2)
    assert out_small.shape == (8, _NUM_CLASSES)
    assert jnp.allclose(out_small, ref_small, atol=1e-5, rtol=1e-5)

    # Packed Pallas kernel path (B % 4 == 0, 128 % latent == 0), >=2 grid steps.
    x_pack = jax.random.normal(k2, (512, latent_size), dtype=jnp.float32)
    out_pack = jax.block_until_ready(
        classifier_forward(x_pack, w1, b1, w2, b2, min_pallas_batch=0))
    ref_pack = reference_forward(x_pack, w1, b1, w2, b2)
    assert out_pack.shape == (512, _NUM_CLASSES)
    assert jnp.allclose(out_pack, ref_pack, atol=1e-5, rtol=1e-5)

    # Generic Pallas path (B not a multiple of 4 -> ragged last tile masking).
    x_gen = jax.random.normal(k3, (300, latent_size), dtype=jnp.float32)
    out_gen = jax.block_until_ready(
        classifier_forward(x_gen, w1, b1, w2, b2, min_pallas_batch=0))
    ref_gen = reference_forward(x_gen, w1, b1, w2, b2)
    assert out_gen.shape == (300, _NUM_CLASSES)
    assert jnp.allclose(out_gen, ref_gen, atol=1e-5, rtol=1e-5)

    # bf16-in-HBM producer: kernel streams bf16 directly (no wrapper cast of x
    # inside classifier_forward); accumulation stays f32.
    x_bf16 = x_pack.astype(jnp.bfloat16)
    out_bf16 = jax.block_until_ready(
        classifier_forward(x_bf16, w1, b1, w2, b2, min_pallas_batch=0))
    assert jnp.allclose(out_bf16, ref_pack, atol=5e-2, rtol=5e-2)

    print("KERNEL_OK")
</pallas_src>

<mosaic_0001>
module attributes {stable_mosaic.version = 11 : i64} {
  func.func @_mlp_kernel(%arg0: i32, %arg1: memref<64x128xf32, #tpu.memory_space<vmem>>, %arg2: memref<128x64xf32, #tpu.memory_space<vmem>>, %arg3: memref<1x64xf32, #tpu.memory_space<vmem>>, %arg4: memref<64x8xf32, #tpu.memory_space<vmem>>, %arg5: memref<1x8xf32, #tpu.memory_space<vmem>>, %arg6: memref<64x8xf32, #tpu.memory_space<vmem>>) attributes {dimension_semantics = [#tpu.dimension_semantics<parallel>], iteration_bounds = array<i64: 2>, scalar_prefetch = 0 : i64, scratch_operands = 0 : i64, tpu.core_type = #tpu.core_type<tc>, window_params = [{transform_indices = @transform_0, window_bounds = array<i64: 64, 128>}, {pipeline_mode = #tpu.pipeline_mode<synchronous>, transform_indices = @transform_1, window_bounds = array<i64: 128, 64>}, {pipeline_mode = #tpu.pipeline_mode<synchronous>, transform_indices = @transform_2, window_bounds = array<i64: 1, 64>}, {pipeline_mode = #tpu.pipeline_mode<synchronous>, transform_indices = @transform_3, window_bounds = array<i64: 64, 8>}, {pipeline_mode = #tpu.pipeline_mode<synchronous>, transform_indices = @transform_4, window_bounds = array<i64: 1, 8>}, {transform_indices = @transform_5, window_bounds = array<i64: 64, 8>}]} {
    %c0 = arith.constant 0 : index
    %c0_0 = arith.constant 0 : index
    %0 = vector.load %arg1[%c0, %c0_0] : memref<64x128xf32, #tpu.memory_space<vmem>>, vector<64x128xf32>
    %c0_1 = arith.constant 0 : index
    %c0_2 = arith.constant 0 : index
    %1 = vector.load %arg2[%c0_1, %c0_2] : memref<128x64xf32, #tpu.memory_space<vmem>>, vector<128x64xf32>
    %cst = arith.constant dense<0.000000e+00> : vector<64x64xf32>
    %2 = tpu.matmul %0, %1, %cst {dimension_numbers = #tpu.dot_dimension_numbers<[1], [0], [0], [1], [0, 0, 1, 1], [], []>} : vector<64x128xf32>, vector<128x64xf32>, vector<64x64xf32> -> vector<64x64xf32>
    %c0_3 = arith.constant 0 : index
    %c0_4 = arith.constant 0 : index
    %3 = vector.load %arg3[%c0_3, %c0_4] : memref<1x64xf32, #tpu.memory_space<vmem>>, vector<1x64xf32>
    %4 = vector.broadcast %3 : vector<1x64xf32> to vector<64x64xf32>
    %5 = arith.addf %2, %4 : vector<64x64xf32>
    %cst_5 = arith.constant 0.000000e+00 : f32
    %6 = vector.broadcast %cst_5 : f32 to vector<64x64xf32>
    %7 = arith.maximumf %5, %6 : vector<64x64xf32>
    %c0_6 = arith.constant 0 : index
    %c0_7 = arith.constant 0 : index
    %8 = vector.load %arg4[%c0_6, %c0_7] : memref<64x8xf32, #tpu.memory_space<vmem>>, vector<64x8xf32>
    %cst_8 = arith.constant dense<0.000000e+00> : vector<64x8xf32>
    %9 = tpu.matmul %7, %8, %cst_8 {dimension_numbers = #tpu.dot_dimension_numbers<[1], [0], [0], [1], [0, 0, 1, 1], [], []>} : vector<64x64xf32>, vector<64x8xf32>, vector<64x8xf32> -> vector<64x8xf32>
    %c0_9 = arith.constant 0 : index
    %c0_10 = arith.constant 0 : index
    %10 = vector.load %arg5[%c0_9, %c0_10] : memref<1x8xf32, #tpu.memory_space<vmem>>, vector<1x8xf32>
    %11 = vector.broadcast %10 : vector<1x8xf32> to vector<64x8xf32>
    %12 = arith.addf %9, %11 : vector<64x8xf32>
    %c0_11 = arith.constant 0 : index
    %c0_12 = arith.constant 0 : index
    %13 = vector.load %arg6[%c0_11, %c0_12] : memref<64x8xf32, #tpu.memory_space<vmem>>, vector<64x8xf32>
    tpu.vector_store %arg6[%c0_11, %c0_12], %12 {strides = array<i32>} : memref<64x8xf32, #tpu.memory_space<vmem>>, vector<64x8xf32>,
    return
  }
  func.func @transform_0(%arg0: i32) -> (i32, i32) {
    %c0_i32 = arith.constant 0 : i32
    %c0_i32_0 = arith.constant 0 : i32
    return %arg0, %c0_i32 : i32, i32
  }
  func.func @transform_1(%arg0: i32) -> (i32, i32) {
    %c0_i32 = arith.constant 0 : i32
    %c0_i32_0 = arith.constant 0 : i32
    %c0_i32_1 = arith.constant 0 : i32
    return %c0_i32, %c0_i32_0 : i32, i32
  }
  func.func @transform_2(%arg0: i32) -> (i32, i32) {
    %c0_i32 = arith.constant 0 : i32
    %c0_i32_0 = arith.constant 0 : i32
    %c0_i32_1 = arith.constant 0 : i32
    return %c0_i32, %c0_i32_0 : i32, i32
  }
  func.func @transform_3(%arg0: i32) -> (i32, i32) {
    %c0_i32 = arith.constant 0 : i32
    %c0_i32_0 = arith.constant 0 : i32
    %c0_i32_1 = arith.constant 0 : i32
    return %c0_i32, %c0_i32_0 : i32, i32
  }
  func.func @transform_4(%arg0: i32) -> (i32, i32) {
    %c0_i32 = arith.constant 0 : i32
    %c0_i32_0 = arith.constant 0 : i32
    %c0_i32_1 = arith.constant 0 : i32
    return %c0_i32, %c0_i32_0 : i32, i32
  }
  func.func @transform_5(%arg0: i32) -> (i32, i32) {
    %c0_i32 = arith.constant 0 : i32
    %c0_i32_0 = arith.constant 0 : i32
    return %arg0, %c0_i32 : i32, i32
  }
}

</mosaic_0001>

<bundles_post_ra>
// kernel: tpu_custom_call.1
= control target key start
LH: loop header
LB: loop body
LE: loop exit
PB: predicated region body
PF: predicated region fallthrough
CT: control target
= control target key end

     0   :  { %s809_s18 = smov 0   ;;  %s937_s0 = inlined_call_operand.vmem [shape: f32[128,128], index: 0, kind: input, shape index: {}]   ;;  %s938_s1 = inlined_call_operand.vmem [shape: f32[128,64], index: 1, kind: input, shape index: {}]   ;;  %s939_s2 = inlined_call_operand.vmem [shape: f32[1,64], index: 2, kind: input, shape index: {}]   ;;  %s940_s3 = inlined_call_operand.vmem [shape: f32[64,8], index: 3, kind: input, shape index: {}]   ;;  %s941_s4 = inlined_call_operand.vmem [shape: f32[1,8], index: 4, kind: input, shape index: {}]   ;;  %s942_s5 = inlined_call_operand.vmem [shape: f32[128,8], index: 5, kind: output, shape index: {}]  }
   0x1 LB: > { %s582_s19 = sadd.s32 4294967295, %s777_s18   ;;  %p586_p0 = scmp.ge.s32.totalorder %s777_s18, 1  ;;  %s777_s18 = sphi %s809_s18, %s15_s18  }
   0x2   : > { %p188_p1 = scmp.lt.s32.totalorder %s777_s18, 3 }
   0x4   : > { %p189_p2 = pnand %p586_p0, %p188_p1 }
   0x5   : > { %v236_v0 = vld [vmem:[%s938_s1] sm:$0xff] (!%p189_p2)  ;;  %v237_v1 = vld [vmem:[%s938_s1 + $0x8] sm:$0xff] (!%p189_p2)  ;;  %v238_v2 = vld [vmem:[%s938_s1 + $0x10] sm:$0xff] (!%p189_p2)  ;;  %s587_s26 = sshll.u32 (!%p189_p2), %s582_s19, 3  ;;  %vm387_vm0 = vcmask (!%p189_p2), 523264   ;;  %vm517_vm1 = vcmask (!%p189_p2), 64512  }
   0x6   : > { %192 = sbr.rel (%p189_p2) target bundleno = 486 (0x1e6), region = 40  ;;  %v715_v3 = vpack.c.bf16 (!%p189_p2), %v237_v1, %v236_v0  ;;  %v239_v4 = vld [vmem:[%s938_s1 + $0x18] sm:$0xff] (!%p189_p2)  ;;  %p217_p3 = scmp.lt.s32.totalorder (!%p189_p2), %s587_s26, 15  ;;  %v240_v6 = vld [vmem:[%s938_s1 + $0x20] sm:$0xff] (!%p189_p2)  ;;  %v241_v7 = vld [vmem:[%s938_s1 + $0x28] sm:$0xff] (!%p189_p2) }
   0x7   : > { %v719_v5 = vpack.c.bf16 (!%p189_p2), %v239_v4, %v238_v2  ;;  %v723_v8 = vpack.c.bf16 (!%p189_p2), %v241_v7, %v240_v6  ;;  %v242_v9 = vld [vmem:[%s938_s1 + $0x30] sm:$0xff] (!%p189_p2)  ;;  %v372_v10 = vld [vmem:[%s940_s3] sm:$0xff] (!%p189_p2)  ;;  %v373_v11 = vld [vmem:[%s940_s3 + $0x8] sm:$0xff] (!%p189_p2) }
   0x8   : > { %716 = vmatprep.subr.bf16.mxu0 (!%p189_p2), %v715_v3  ;;  %v243_v12 = vld [vmem:[%s938_s1 + $0x38] sm:$0xff] (!%p189_p2)  ;;  %v747_v13 = vpack.c.bf16 (!%p189_p2), %v373_v11, %v372_v10  ;;  %v374_v14 = vld [vmem:[%s940_s3 + $0x10] sm:$0xff] (!%p189_p2)  ;;  %v376_v18 = vld [vmem:[%s940_s3 + $0x20] sm:$0xff] (!%p189_p2) }
   0x9   : > { %718 = vmatpush3.bf16.msra.mxu0 (!%p189_p2), %v715_v3  ;;  %v375_v15 = vld [vmem:[%s940_s3 + $0x18] sm:$0xff] (!%p189_p2)  ;;  %v727_v19 = vpack.c.bf16 (!%p189_p2), %v243_v12, %v242_v9  ;;  %v377_v20 = vld [vmem:[%s940_s3 + $0x28] sm:$0xff] (!%p189_p2)  ;;  %v244_v21 = vld [vmem:[%s938_s1 + $0x40] sm:$0xff] (!%p189_p2) }
   0xa   : > { %720 = vmatprep.subr.bf16.mxu0 (!%p189_p2), %v719_v5  ;;  %v751_v17 = vpack.c.bf16 (!%p189_p2), %v375_v15, %v374_v14  ;;  %748 = vmatprep.subr.bf16.mxu1 (!%p189_p2), %v747_v13  ;;  %v245_v22 = vld [vmem:[%s938_s1 + $0x48] sm:$0xff] (!%p189_p2)  ;;  %v755_v23 = vpack.c.bf16 (!%p189_p2), %v377_v20, %v376_v18  ;;  %v246_v25 = vld [vmem:[%s938_s1 + $0x50] sm:$0xff] (!%p189_p2)  ;;  %v247_v26 = vld [vmem:[%s938_s1 + $0x58] sm:$0xff] (!%p189_p2) }
   0xb   : > { %750 = vmatpush3.bf16.msra.mxu1 (!%p189_p2), %v747_v13  ;;  %v731_v24 = vpack.c.bf16 (!%p189_p2), %v245_v22, %v244_v21  ;;  %v735_v27 = vpack.c.bf16 (!%p189_p2), %v247_v26, %v246_v25  ;;  %v248_v28 = vld [vmem:[%s938_s1 + $0x60] sm:$0xff] (!%p189_p2)  ;;  %v249_v29 = vld [vmem:[%s938_s1 + $0x68] sm:$0xff] (!%p189_p2)  ;;  %v250_v31 = vld [vmem:[%s938_s1 + $0x70] sm:$0xff] (!%p189_p2) }
   0xc   : > { %752 = vmatprep.subr.bf16.mxu1 (!%p189_p2), %v751_v17  ;;  %v739_v30 = vpack.c.bf16 (!%p189_p2), %v249_v29, %v248_v28  ;;  %v251_v32 = vld [vmem:[%s938_s1 + $0x78] sm:$0xff] (!%p189_p2)  ;;  %v378_v41 = vld [vmem:[%s940_s3 + $0x30] sm:$0xff] (!%p189_p2)  ;;  %v591_v44 = vld [vmem:[%s939_s2] ss:$0 sm:$0xff] (!%p189_p2) }
   0xd   : > { %s944_s26 = smov (!%p217_p3, %s587_s26), 15  ;;  %722 = vmatpush3.bf16.msra.mxu0 %v719_v5  ;;  %v743_v33 = vpack.c.bf16 %v251_v32, %v250_v31  ;;  %v379_v42 = vld [vmem:[%s940_s3 + $0x38] sm:$0xff]  ;;  %v592_v5 = vld [vmem:[%s941_s4] ss:$0 sm:$0xff] }
   0xe   : > { %s588_s10 = sshll.u32 %s944_s26, 3  ;;  %724 = vmatprep.subr.bf16.mxu0 %v723_v8  ;;  %v759_v43 = vpack.c.bf16 %v379_v42, %v378_v41 }
   0xf   : > { %s855_s20 = scalar_lea.vmem %s937_s0, %s588_s10  ;;  %754 = vmatpush3.bf16.msra.mxu1 %v751_v17  ;;  %s226_s9 = scalar_lea.vmem %s942_s5, %s588_s10 }
  0x10   : > { %v228_v16 = vld [vmem:[%s855_s20] sm:$0xff]  ;;  %756 = vmatprep.subr.bf16.mxu1 %v755_v23  ;;  %v229_v34 = vld [vmem:[%s855_s20 + $0x8] sm:$0xff]  ;;  %v230_v35 = vld [vmem:[%s855_s20 + $0x10] sm:$0xff] }
  0x11   : > { %675 = vmatprep.mubr.f32.mxu0 %v228_v16  ;;  %726 = vmatpush3.bf16.msra.mxu0 %v723_v8  ;;  %v231_v36 = vld [vmem:[%s855_s20 + $0x18] sm:$0xff]  ;;  %v232_v37 = vld [vmem:[%s855_s20 + $0x20] sm:$0xff]  ;;  %v233_v38 = vld [vmem:[%s855_s20 + $0x28] sm:$0xff] }
  0x12   : > { %728 = vmatprep.subr.bf16.mxu0 %v727_v19  ;;  %v234_v39 = vld [vmem:[%s855_s20 + $0x30] sm:$0xff]  ;;  %v235_v40 = vld [vmem:[%s855_s20 + $0x38] sm:$0xff] }
  0x13   : > { %758 = vmatpush3.bf16.msra.mxu1 %v755_v23 }
  0x14   : > { %760 = vmatprep.subr.bf16.mxu1 %v759_v43 }
  0x15   : > { %730 = vmatpush3.bf16.msra.mxu0 %v727_v19 }
  0x16   : > { %732 = vmatprep.subr.bf16.mxu0 %v731_v24 }
  0x17   : > { %762 = vmatpush3.bf16.msra.mxu1 %v759_v43 }
  0x19   : > { %734 = vmatpush3.bf16.msra.mxu0 %v731_v24 }
  0x1a   : > { %736 = vmatprep.subr.bf16.mxu0 %v735_v27 }
  0x1d   : > { %738 = vmatpush3.bf16.msra.mxu0 %v735_v27 }
  0x1e   : > { %740 = vmatprep.subr.bf16.mxu0 %v739_v30 }
  0x21   : > { %742 = vmatpush3.bf16.msra.mxu0 %v739_v30 }
  0x22   : > { %744 = vmatprep.subr.bf16.mxu0 %v743_v33 }
  0x25   : > { %746 = vmatpush3.bf16.msra.mxu0 %v743_v33 }
  0x28   : > { %676 = vmatmul.mubr.f32.vlgmr.msra.gmra.mrb[0].mxu0 %v229_v34 }
  0x29   : > { %678 = vmatprep.mubr.f32.mxu0 %v230_v35 }
  0x2c   : > { %679 = vmatmul.mubr.f32.gmra.mrb[2].mxu0 %v231_v36 }
  0x2d   : > { %681 = vmatprep.mubr.f32.mxu0 %v232_v37 }
  0x30   : > { %682 = vmatmul.mubr.f32.gmra.mrb[4].mxu0 %v233_v38 }
  0x31   : > { %684 = vmatprep.mubr.f32.mxu0 %v234_v39 }
  0x34   : > { %685 = vmatmul.mubr.f32.gmra.mrb[6].mxu0 %v235_v40 }
  0xfb   : > { %v677_v45 = vpop.f32.mrb[0].mxu0 }
  0xfc   : > { %v331_v46 = vadd.f32 %v677_v45, %v591_v44  ;;  %v325_v47 = vpop.f32.mrb[1].mxu0 }
  0xfd   : > { %v326_v48 = vadd.f32 %v591_v44, %v325_v47 }
  0xfe   : > { %v365_v51 = vmax.f32 %v331_v46, 0.0 }
  0xff   : > { %v364_v49 = vmax.f32 %v326_v48, 0.0  ;;  %v680_v50 = vpop.f32.mrb[2].mxu0 }
 0x100   : > { %v341_v52 = vadd.f32 %v680_v50, %v591_v44  ;;  %v335_v53 = vpop.f32.mrb[3].mxu0 }
 0x101   : > { %v336_v54 = vadd.f32 %v591_v44, %v335_v53  ;;  %703 = vmatprep.mubr.msk.f32.mxu1 %vm387_vm0, %v364_v49 }
 0x102   : > { %704 = vmatmul.mubr.msk.f32.vlgmr.msra.gmra.mrb[0].mxu1 %vm387_vm0, %v365_v51  ;;  %v367_v57 = vmax.f32 %v341_v52, 0.0 }
 0x103   : > { %v366_v55 = vmax.f32 %v336_v54, 0.0  ;;  %v683_v56 = vpop.f32.mrb[4].mxu0 }
 0x104   : > { %v351_v58 = vadd.f32 %v683_v56, %v591_v44  ;;  %v345_v59 = vpop.f32.mrb[5].mxu0 }
 0x105   : > { %v346_v60 = vadd.f32 %v591_v44, %v345_v59  ;;  %706 = vmatprep.mubr.msk.f32.mxu1 %vm387_vm0, %v366_v55 }
 0x106   : > { %707 = vmatmul.mubr.msk.f32.gmra.mrb[2].mxu1 %vm387_vm0, %v367_v57  ;;  %v369_v63 = vmax.f32 %v351_v58, 0.0 }
 0x107   : > { %v368_v61 = vmax.f32 %v346_v60, 0.0  ;;  %v686_v62 = vpop.f32.mrb[6].mxu0 }
 0x108   : > { %v361_v0 = vadd.f32 %v686_v62, %v591_v44  ;;  %v355_v1 = vpop.f32.mrb[7].mxu0 }
 0x109   : > { %v356_v2 = vadd.f32 %v591_v44, %v355_v1  ;;  %709 = vmatprep.mubr.msk.f32.mxu1 %vm387_vm0, %v368_v61 }
 0x10a   : > { %710 = vmatmul.mubr.msk.f32.gmra.mrb[4].mxu1 %vm387_vm0, %v369_v63  ;;  %v371_v4 = vmax.f32 %v361_v0, 0.0 }
 0x10b   : > { %v370_v3 = vmax.f32 %v356_v2, 0.0 }
 0x10d   : > { %712 = vmatprep.mubr.msk.f32.mxu1 %vm387_vm0, %v370_v3 }
 0x10e   : > { %713 = vmatmul.mubr.msk.f32.gmra.mrb[6].mxu1 %vm387_vm0, %v371_v4 }
 0x1d5   : > { %v705_v6 = vpop.f32.mrb[0].mxu1 }
 0x1d6   : > { %v484_v7 = vadd.f32 %v705_v6, %v592_v5  ;;  %v478_v8 = vpop.f32.mrb[1].mxu1 }
 0x1d7   : > { %v479_v9 = vadd.f32 %v592_v5, %v478_v8 }
 0x1d8   : > { %519 = vst.msk [vmem:[%s226_s9 + $0x8] sm:$0xff] %vm517_vm1, %v484_v7 }
 0x1d9   : > { %518 = vst.msk [vmem:[%s226_s9] sm:$0xff] %vm517_vm1, %v479_v9  ;;  %v708_v10 = vpop.f32.mrb[2].mxu1 }
 0x1da   : > { %v494_v11 = vadd.f32 %v708_v10, %v592_v5  ;;  %v488_v12 = vpop.f32.mrb[3].mxu1 }
 0x1db   : > { %v489_v13 = vadd.f32 %v592_v5, %v488_v12 }
 0x1dc   : > { %521 = vst.msk [vmem:[%s226_s9 + $0x18] sm:$0xff] %vm517_vm1, %v494_v11 }
 0x1dd   : > { %520 = vst.msk [vmem:[%s226_s9 + $0x10] sm:$0xff] %vm517_vm1, %v489_v13  ;;  %v711_v14 = vpop.f32.mrb[4].mxu1 }
 0x1de   : > { %v504_v15 = vadd.f32 %v711_v14, %v592_v5  ;;  %v498_v16 = vpop.f32.mrb[5].mxu1 }
 0x1df   : > { %v499_v17 = vadd.f32 %v592_v5, %v498_v16 }
 0x1e0   : > { %523 = vst.msk [vmem:[%s226_s9 + $0x28] sm:$0xff] %vm517_vm1, %v504_v15 }
 0x1e1   : > { %522 = vst.msk [vmem:[%s226_s9 + $0x20] sm:$0xff] %vm517_vm1, %v499_v17  ;;  %v714_v18 = vpop.f32.mrb[6].mxu1 }
 0x1e2   : > { %v514_v19 = vadd.f32 %v714_v18, %v592_v5  ;;  %v508_v20 = vpop.f32.mrb[7].mxu1 }
 0x1e3   : > { %v509_v21 = vadd.f32 %v592_v5, %v508_v20 }
 0x1e4   : > { %525 = vst.msk [vmem:[%s226_s9 + $0x38] sm:$0xff] %vm517_vm1, %v514_v19 }
 0x1e5   : > { %524 = vst.msk [vmem:[%s226_s9 + $0x30] sm:$0xff] %vm517_vm1, %v509_v21 }
 0x1e6 PF: > { %s15_s18 = sadd.s32 1, %s777_s18  }
 0x1e7   : > { %p12_p4 = scmp.ge.s32.totalorder %s15_s18, 4  }
 0x1e9   :  { %14 = sbr.rel (!%p12_p4) target bundleno = 1 (0x1), region = 70 }

</bundles_post_ra>
